<compile_context>
chip_gen: v7x
topology: tpu7x:2x2x1
jax: 0.10.0
libtpu: 0.0.40
codegen_flags: <defaults>
</compile_context>

<pallas_src>
import functools

import jax
import jax.numpy as jnp
from jax.experimental import pallas as pl
from jax.experimental.pallas import tpu as pltpu


def _cdiv(a, b):
    return -(-a // b)


def _round_up(x, m):
    return ((x + m - 1) // m) * m


def _fc_kernel(x_ref, w_ref, b_ref, logits_ref):
    """x_ref: (tm, D) VMEM, native dtype; w_ref: (1, D) VMEM f32; b_ref: (1,1) SMEM."""
    prod = x_ref[...].astype(jnp.float32) * w_ref[...]          # (tm, D) f32, VPU
    d = prod.shape[-1]
    if d > 128 and d % 128 == 0:
        # VALU pre-reduction across the D/128 lane-groups (whole-vreg adds, no
        # XLU), leaving a single cross-lane reduce per surviving vreg.
        acc = prod[:, :128]
        for j in range(1, d // 128):
            acc = acc + prod[:, j * 128:(j + 1) * 128]
    else:
        acc = prod
    logits = jnp.sum(acc, axis=-1, keepdims=True) + b_ref[0, 0]  # (tm, 1) f32
    logits_ref[...] = logits.astype(logits_ref.dtype)


def _pick_row_tile(n, d, in_itemsize, sublane, requested):
    """Row tile: ~4 MiB of x per grid step, VMEM-budgeted, >= 4 grid steps."""
    if requested is None:
        target_bytes = 4 * 1024 * 1024                 # ~4 MiB of x per step
        tm = target_bytes // max(d * in_itemsize, 1)
        tm = min(8192, max(sublane, _round_up(tm, sublane)))
    else:
        tm = max(sublane, _round_up(int(requested), sublane))

    # VMEM budget: x double-buffer + lane-padded (tm,128) f32 logits double-buffer.
    def usage(t):
        return 2 * t * d * in_itemsize + 2 * t * 128 * 4

    while tm > sublane and usage(tm) > 20 * 1024 * 1024:
        tm = max(sublane, _round_up(tm // 2, sublane))

    # Keep >= 4 grid steps so both v7x TensorCores each get >= 2 steps.
    tm = min(tm, _round_up(max(_cdiv(n, 4), sublane), sublane))
    # Never (much) larger than the problem itself.
    tm = min(tm, _round_up(max(n, sublane), sublane))
    return tm


@functools.partial(jax.jit, static_argnames=("tm", "force_pallas"))
def multilabel_binary_fc_forward(x, w, b, *, tm=None, force_pallas=False):
    """Forward pass of MultiLabelBinaryFCLayer (task='regression_mil').

    Args:
      x: [N, D] input features (any float dtype; streamed natively, f32 accum).
      w: [D, 1] weight (transposed nn.Linear weight).
      b: bias, shape (), (1,) or (1, 1).
      tm: optional row-tile override (rounded up to the dtype sublane multiple).
      force_pallas: run the Pallas kernel even for tiny inputs.

    Returns:
      (logits [N,1] f32, Y_prob=None, Y_hat [N,1] f32, A_raw=None, results_dict=None)
    """
    n, d = x.shape
    in_itemsize = jnp.dtype(x.dtype).itemsize
    sublane = max(8, 32 // in_itemsize)                 # 8 f32 / 16 bf16 / 32 int8
    w_row = jnp.reshape(w, (1, d)).astype(jnp.float32)  # lane-dense weight row (tiny)
    b2d = jnp.reshape(b, (1, 1)).astype(jnp.float32)

    # Tiny problems (< 2 MiB of x): pallas_call launch + per-step overhead
    # dominates; let XLA fuse the GEMV and the *100 scale instead.
    if (not force_pallas) and n * d * in_itemsize < (2 << 20):
        logits = x.astype(jnp.float32) @ w.astype(jnp.float32).reshape(d, 1) + b2d
        return logits, None, logits * 100.0, None, None

    tm_eff = _pick_row_tile(n, d, in_itemsize, sublane, tm)
    grid = (_cdiv(n, tm_eff),)

    cost = pl.CostEstimate(
        flops=2 * n * d + 2 * n,
        transcendentals=0,
        bytes_accessed=n * d * in_itemsize + d * 4 + 4 + n * 4,
    )

    logits = pl.pallas_call(
        _fc_kernel,
        out_shape=jax.ShapeDtypeStruct((n, 1), jnp.float32),
        grid_spec=pltpu.PrefetchScalarGridSpec(
            num_scalar_prefetch=0,
            grid=grid,
            in_specs=[
                # Big double-buffered x row tile streaming from HBM (native dtype).
                pl.BlockSpec((tm_eff, d), lambda i: (i, 0)),
                # Full lane-dense weight row (same block every step).
                pl.BlockSpec((1, d), lambda i: (0, 0)),
                # Bias as an SMEM scalar (no lane-padded VMEM tile / vector load).
                pl.BlockSpec((1, 1), lambda i: (0, 0),
                             memory_space=pltpu.MemorySpace.SMEM),
            ],
            out_specs=pl.BlockSpec((tm_eff, 1), lambda i: (i, 0)),   # logits only
        ),
        compiler_params=pltpu.CompilerParams(
            dimension_semantics=("parallel",),
            # Budget-checked above (<= ~20 MiB actual); 32 MiB stays well under
            # v7x's 64 MiB physical VMEM and raises v5e's 16 MiB scoped default.
            vmem_limit_bytes=32 * 1024 * 1024,
        ),
        cost_estimate=cost,
    )(x, w_row, b2d)

    # 'regression_mil': Y_hat = 100 * logits -- trivial wrapper-side op (2*N*4
    # bytes), keeps the kernel single-output.
    yhat = logits * 100.0

    Y_prob = None
    A_raw = None
    results_dict = None
    return logits, Y_prob, yhat, A_raw, results_dict


def init_params(key, proj_dim):
    """Matches init_model(): xavier_normal_ weight, zero bias for nn.Linear(proj_dim, 1)."""
    fan_in, fan_out = proj_dim, 1
    std = (2.0 / (fan_in + fan_out)) ** 0.5
    w_pt = jax.random.normal(key, (fan_out, fan_in), dtype=jnp.float32) * std
    w = w_pt.T                                   # [D, 1] (transposed nn.Linear weight)
    b = jnp.zeros((1, 1), dtype=jnp.float32)
    return w, b


if __name__ == "__main__":
    key = jax.random.PRNGKey(0)
    k_x, k_w, k_x2, k_w2 = jax.random.split(key, 4)

    # --- Primary test: module-default proj_dim=512, f32, ragged last block. ---
    # N deliberately NOT a multiple of the row tile; grid has >= 4 steps and the
    # D/128 = 4 VALU lane-group pre-reduction path is exercised.
    N, proj_dim = 600, 512
    x = jax.random.normal(k_x, (N, proj_dim), dtype=jnp.float32)
    w, b = init_params(k_w, proj_dim)
    b = b + 0.25   # nonzero bias to exercise the SMEM bias-add path

    logits, Y_prob, Y_hat, A_raw, results_dict = multilabel_binary_fc_forward(
        x, w, b, force_pallas=True
    )
    jax.block_until_ready((logits, Y_hat))

    logits_ref = x @ w + b
    yhat_ref = logits_ref * 100.0
    assert logits.shape == (N, 1) and Y_hat.shape == (N, 1)
    assert jnp.allclose(logits, logits_ref, atol=1e-4, rtol=1e-5)
    assert jnp.allclose(Y_hat, yhat_ref, atol=1e-2, rtol=1e-5)
    assert Y_prob is None and A_raw is None and results_dict is None

    # --- bf16 native-dtype streaming path (same f32 accumulation in-kernel). ---
    x_bf16 = x.astype(jnp.bfloat16)
    lb, _, yb, _, _ = multilabel_binary_fc_forward(x_bf16, w, b, force_pallas=True)
    jax.block_until_ready((lb, yb))
    lb_ref = x_bf16.astype(jnp.float32) @ w + b
    assert jnp.allclose(lb, lb_ref, atol=1e-4, rtol=1e-5)
    assert jnp.allclose(yb, lb_ref * 100.0, atol=1e-2, rtol=1e-5)

    # --- D=128 path (no lane-group pre-reduction loop). ---
    N2, D2 = 300, 128
    x2 = jax.random.normal(k_x2, (N2, D2), dtype=jnp.float32)
    w2, b2 = init_params(k_w2, D2)
    l2, _, y2, _, _ = multilabel_binary_fc_forward(x2, w2, b2, force_pallas=True)
    jax.block_until_ready((l2, y2))
    l2_ref = x2 @ w2 + b2
    assert jnp.allclose(l2, l2_ref, atol=1e-4, rtol=1e-5)
    assert jnp.allclose(y2, l2_ref * 100.0, atol=1e-2, rtol=1e-5)

    # --- Tiny-input fast path (skips Pallas) must agree as well. ---
    xs = x[:16]
    ls, _, ys, _, _ = multilabel_binary_fc_forward(xs, w, b)
    assert jnp.allclose(ls, xs @ w + b, atol=1e-5, rtol=1e-5)
    assert jnp.allclose(ys, (xs @ w + b) * 100.0, atol=1e-3, rtol=1e-5)

    print("KERNEL_OK")
</pallas_src>

<mosaic_0001>
module attributes {stable_mosaic.version = 11 : i64} {
  func.func @_fc_kernel(%arg0: i32, %arg1: memref<152x512xf32, #tpu.memory_space<vmem>>, %arg2: memref<1x512xf32, #tpu.memory_space<vmem>>, %arg3: memref<1x1xf32, #tpu.memory_space<smem>>, %arg4: memref<152x1xf32, #tpu.memory_space<vmem>>) attributes {dimension_semantics = [#tpu.dimension_semantics<parallel>], iteration_bounds = array<i64: 4>, scalar_prefetch = 0 : i64, scratch_operands = 0 : i64, tpu.core_type = #tpu.core_type<tc>, window_params = [{transform_indices = @transform_0, window_bounds = array<i64: 152, 512>}, {pipeline_mode = #tpu.pipeline_mode<synchronous>, transform_indices = @transform_1, window_bounds = array<i64: 1, 512>}, {transform_indices = @transform_2, window_bounds = array<i64: 1, 1>}, {transform_indices = @transform_3, window_bounds = array<i64: 152, 1>}]} {
    %c0 = arith.constant 0 : index
    %c0_0 = arith.constant 0 : index
    %0 = vector.load %arg1[%c0, %c0_0] : memref<152x512xf32, #tpu.memory_space<vmem>>, vector<152x512xf32>
    %c0_1 = arith.constant 0 : index
    %c0_2 = arith.constant 0 : index
    %1 = vector.load %arg2[%c0_1, %c0_2] : memref<1x512xf32, #tpu.memory_space<vmem>>, vector<1x512xf32>
    %2 = vector.broadcast %1 : vector<1x512xf32> to vector<152x512xf32>
    %3 = arith.mulf %0, %2 : vector<152x512xf32>
    %4 = vector.extract_strided_slice %3 {offsets = [0, 0], sizes = [152, 128], strides = [1, 1]} : vector<152x512xf32> to vector<152x128xf32>
    %5 = vector.extract_strided_slice %3 {offsets = [0, 128], sizes = [152, 128], strides = [1, 1]} : vector<152x512xf32> to vector<152x128xf32>
    %6 = arith.addf %4, %5 : vector<152x128xf32>
    %7 = vector.extract_strided_slice %3 {offsets = [0, 256], sizes = [152, 128], strides = [1, 1]} : vector<152x512xf32> to vector<152x128xf32>
    %8 = arith.addf %6, %7 : vector<152x128xf32>
    %9 = vector.extract_strided_slice %3 {offsets = [0, 384], sizes = [152, 128], strides = [1, 1]} : vector<152x512xf32> to vector<152x128xf32>
    %10 = arith.addf %8, %9 : vector<152x128xf32>
    %cst = arith.constant dense<0.000000e+00> : vector<152xf32>
    %11 = vector.multi_reduction <add>, %10, %cst [1] : vector<152x128xf32> to vector<152xf32>
    %12 = vector.shape_cast %11 : vector<152xf32> to vector<152x1xf32>
    %c0_3 = arith.constant 0 : index
    %c0_4 = arith.constant 0 : index
    %13 = memref.load %arg3[%c0_3, %c0_4] : memref<1x1xf32, #tpu.memory_space<smem>>
    %14 = vector.broadcast %13 : f32 to vector<152x1xf32>
    %15 = arith.addf %12, %14 : vector<152x1xf32>
    %c0_5 = arith.constant 0 : index
    %c0_6 = arith.constant 0 : index
    %16 = vector.load %arg4[%c0_5, %c0_6] : memref<152x1xf32, #tpu.memory_space<vmem>>, vector<152x1xf32>
    tpu.vector_store %arg4[%c0_5, %c0_6], %15 {strides = array<i32>} : memref<152x1xf32, #tpu.memory_space<vmem>>, vector<152x1xf32>,
    return
  }
  func.func @transform_0(%arg0: i32) -> (i32, i32) {
    %c0_i32 = arith.constant 0 : i32
    %c0_i32_0 = arith.constant 0 : i32
    return %arg0, %c0_i32 : i32, i32
  }
  func.func @transform_1(%arg0: i32) -> (i32, i32) {
    %c0_i32 = arith.constant 0 : i32
    %c0_i32_0 = arith.constant 0 : i32
    %c0_i32_1 = arith.constant 0 : i32
    return %c0_i32, %c0_i32_0 : i32, i32
  }
  func.func @transform_2(%arg0: i32) -> (i32, i32) {
    %c0_i32 = arith.constant 0 : i32
    %c0_i32_0 = arith.constant 0 : i32
    %c0_i32_1 = arith.constant 0 : i32
    return %c0_i32, %c0_i32_0 : i32, i32
  }
  func.func @transform_3(%arg0: i32) -> (i32, i32) {
    %c0_i32 = arith.constant 0 : i32
    %c0_i32_0 = arith.constant 0 : i32
    return %arg0, %c0_i32 : i32, i32
  }
}

</mosaic_0001>

<bundles_post_ra>
// kernel: multilabel_binary_fc_forward.1
= control target key start
LH: loop header
LB: loop body
LE: loop exit
PB: predicated region body
PF: predicated region fallthrough
CT: control target
= control target key end

     0   :  { %s1620_s0 = inlined_call_operand.hbm [shape: f32[600,512], index: 0, kind: input, shape index: {}]   ;;  %s1621_s1 = inlined_call_operand.hbm [shape: f32[1,512], index: 1, kind: input, shape index: {}]   ;;  %s1622_s2 = inlined_call_operand.<no memory space> [shape: f32[1,1], index: 2, kind: input, shape index: {}]   ;;  %s1623_s3 = inlined_call_operand.vmem [shape: f32[600,1], index: 3, kind: output, shape index: {}]  }
   0x1   :  { %8 = sst [smem:[#allocation2]] %s1622_s2 }
   0x2   :  { %9 = vsyncpa [#allocation4], 0 }
   0x3   :  { %11 = vsyncpa [#allocation4 + $0x1], 0 }
   0x4   :  { %12 = vsyncpa [#allocation6], 0  ;;  %s1173_s14 = smov 0   ;;  %s1175_s15 = smov 0  }
   0x5   :  { %s1177_s16 = smov 0   ;;  %s1179_s17 = smov 0  }
   0x6 LB: > { %s1192_s2 = sadd.s32 4294967295, %s1112_s17   ;;  %s1195_s18 = sadd.s32 1, %s1112_s17   ;;  %s1112_s17 = sphi %s1179_s17, %s1644_s17   ;;  %s1108_s16 = sphi %s1177_s16, %s1643_s16   ;;  %s1104_s15 = sphi %s1175_s15, %s1642_s15   ;;  %s1100_s14 = sphi %s1173_s14, %s1641_s14  }
   0x7   : > { %s22_s19 = ssub.s32 %s1112_s17, %s1195_s18  ;;  %s25_s20 = sadd.s32 1, %s1108_s16 }
   0x8   : > { %p23_p0 = scmp.eq.s32.totalorder %s22_s19, 0  ;;  %p32_p1 = scmp.ne.s32.totalorder %s1108_s16, %s1104_s15 }
   0x9   : > { %p33_p2 = scmp.eq.s32.totalorder %s1112_s17, 0  ;;  %p38_p3 = scmp.ne.s32.totalorder %s1104_s15, %s1100_s14 }
   0xa   : > { %s1205_s21 = scalar_select %p23_p0, %s1108_s16, %s25_s20  }
   0xb   : > { %p1207_p4 = por %p33_p2, %p32_p1  ;;  %p1624_p5 = scmp.eq.s32.totalorder %s1192_s2, 0 }
   0xc   : > { %p104_p6 = scmp.eq.s32.totalorder %s1192_s2, 3  ;;  %p839_p7 = scmp.ge.s32.totalorder %s1112_s17, 1 }
   0xd   : > { %s1627_s22 = scalar_select %p1207_p4, 1, 0 }
   0xe   : > { %p1216_p8 = por %p1624_p5, %p38_p3  ;;  %p117_p9 = scmp.lt.s32.totalorder %s1112_s17, 5 }
   0xf   : > { %p1221_p10 = por %p104_p6, %p32_p1  ;;  %s1146_s26 = smov [#allocation5]  }
  0x10   : > { %s1628_s23 = scalar_select %p1216_p8, 1, 0 }
  0x11   : > { %s1629_s24 = scalar_select %p1221_p10, 1, 0 }
  0x12   : > { %p1225_p11 = pnand %p839_p7, %p117_p9  ;;  %s130_s27 = sshll.u32 %s1146_s26, 4  ;;  %s131_s27 = int_to_ptr.vmem [resolvable:$true] %s130_s27 }
  0x13   : > { %s986_s4 = scalar_lea.hbm %s1621_s1, 64 }
  0x14   : > { %s1630_s25 = scalar_select %p1225_p11, 1, 0 }
  0x15   : > { %p876_p12 = pneg %p1225_p11  ;;  %p987_p0 = scmp.ne.s32.totalorder %s1621_s1, %s986_s4 }
  0x16   : > { %p993_p6 = scmp.lt.u32.totalorder %s986_s4, %s1621_s1 }
  0x17   : > { %p1233_p13 = pnand %p876_p12, %p1624_p5 }
  0x19   : > { %p988_p1 = pneg %p1233_p13 }
  0x1b   : > { %p989_p2 = pnand %p988_p1, %p987_p0 }
  0x1d   : > { %p990_p3 = pneg %p989_p2 }
  0x1f   : > { %p995_p7 = pnand %p993_p6, %p990_p3 }
  0x21   : > { %998 = shalt.err (!%p995_p7)
}
  0x22   : > { %s999_s9 = scalar_lea.vmem %s131_s27, 64  ;;  %p1007_p10 = scmp.lt.s32.totalorder %s131_s27, %s131_s27 }
  0x23   : > { %p1000_p9 = scmp.ne.s32.totalorder %s131_s27, %s999_s9  ;;  %p1008_p8 = scmp.lt.s32.totalorder %s999_s9, %s999_s9 }
  0x25   : > { %p1002_p12 = pnand %p1000_p9, %p988_p1  ;;  %p1009_p11 = por %p1008_p8, %p1007_p10 }
  0x27   : > { %p1003_p5 = pneg %p1002_p12 }
  0x29   : > { %p1010_p4 = pnand %p1009_p11, %p1003_p5 }
  0x2b   : > { %1013 = shalt.err (!%p1010_p4)
}
  0x2c   : > { %879 = dma.hbm_to_vmem [thread:$0]  (!%p1233_p13), %s1621_s1, 64, %s131_s27, [#allocation6]  }
  0x2d   : > { %p841_p0 = scmp.ge.s32.totalorder %s1112_s17, 4 }
  0x2e   : > { %p1632_p2 = scmp.ne.s32.totalorder (!%p841_p0), %s1627_s22, 0 }
  0x2f   : > { %140 = sbr.rel (%p841_p0) target bundleno = 89 (0x59), region = 24 }
  0x36   : > { %143 = sbr.rel (!%p1632_p2) target bundleno = 89 (0x59), region = 28  ;;  %s144_s12 = sand.u32 (%p1632_p2), 1, %s1108_s16  }
  0x37   : > { %s149_s13 = smul.u32 (%p1632_p2), 19, %s1112_s17  ;;  %s1261_s28 = scalar_lea.sflag (%p1632_p2), [#allocation4], %s144_s12 }
  0x38   : > { %s868_s14 = smul.u32 (%p1632_p2), 608, %s144_s12 }
  0x39   : > { %s150_s19 = ssub.s32 (%p1632_p2), 75, %s149_s13 }
  0x3a   : > { %p151_p5 = scmp.lt.s32.totalorder (%p1632_p2), %s150_s19, 19  ;;  %s148_s27 = scalar_lea.vmem (%p1632_p2), [#allocation3], %s868_s14 }
  0x3d   : > { %s1646_s19 = smov (!%p151_p5, %s150_s19), 19 }
  0x3e   : > { %s1258_s20 = sshll.u32 %s1646_s19, 9 }
  0x3f   : > { %s156_s26 = ssub.s32 9728, %s1258_s20 }
  0x40   : > { %157 = vsyncadd %s1261_s28, %s156_s26  ;;  %p844_p4 = scmp.ne.s32.totalorder %s1258_s20, 0  ;;  %s867_s22 = smul.u32 9728, %s1112_s17 }
  0x41   : > { %s163_s29 = sshll.u32 %s148_s27, 4  ;;  %s1018_s17 = scalar_lea.hbm %s1620_s0, 38400  ;;  %s1271_s29 = int_to_ptr.vmem [resolvable:$true] %s163_s29 }
  0x42   : > { %s1269_s5 = scalar_lea.hbm %s1620_s0, %s867_s22 }
  0x43   : > { %s1014_s6 = scalar_lea.hbm %s1269_s5, %s1258_s20  ;;  %p1019_p13 = scmp.lt.u32.totalorder %s1269_s5, %s1620_s0 }
  0x44   : > { %p1015_p8 = scmp.ne.s32.totalorder %s1269_s5, %s1014_s6  ;;  %p1020_p1 = scmp.lt.u32.totalorder %s1018_s17, %s1014_s6 }
  0x45   : > { %p1022_p6 = scmp.lt.u32.totalorder %s1014_s6, %s1269_s5 }
  0x46   : > { %p1016_p10 = pnand %p1015_p8, %p844_p4  ;;  %p1021_p3 = por %p1020_p1, %p1019_p13 }
  0x48   : > { %p1017_p11 = pneg %p1016_p10  ;;  %p1023_p7 = por %p1022_p6, %p1021_p3 }
  0x4a   : > { %p1024_p9 = pnand %p1023_p7, %p1017_p11 }
  0x4c   : > { %1027 = shalt.err (!%p1024_p9)
}
  0x4d   : > { %s1028_s11 = scalar_lea.vmem %s1271_s29, %s1258_s20  ;;  %s1147_s12 = smov [#allocation3]  }
  0x4e   : > { %p1029_p12 = scmp.ne.s32.totalorder %s1271_s29, %s1028_s11  ;;  %s1032_s13 = sshll.u32 %s1147_s12, 4  ;;  %s1033_s13 = int_to_ptr.vmem [resolvable:$false] %s1032_s13 }
  0x4f   : > { %s1034_s14 = scalar_lea.vmem %s1033_s13, 19456  ;;  %p1035_p5 = scmp.lt.s32.totalorder %s1271_s29, %s1033_s13 }
  0x50   : > { %p1030_p0 = pnand %p1029_p12, %p844_p4  ;;  %p1036_p8 = scmp.lt.s32.totalorder %s1034_s14, %s1028_s11 }
  0x52   : > { %p1031_p2 = pneg %p1030_p0  ;;  %p1037_p10 = por %p1036_p8, %p1035_p5 }
  0x54   : > { %p1038_p13 = pnand %p1037_p10, %p1031_p2 }
  0x56   : > { %1041 = shalt.err (!%p1038_p13)
}
  0x57   : > { %s1148_s19 = smov 512   ;;  %s1149_s26 = smov 32  }
  0x58   : > { %169 = dma.hbm_to_vmem [thread:$0]  (%p844_p4), %s1269_s5, %s1258_s20, %s1271_s29, %s1261_s28, %s1148_s19, %s1148_s19, %s1149_s26  }
  0x59 PF: > { %p1633_p11 = scmp.ne.s32.totalorder %s1630_s25, 0 }
  0x5a   : > { %s1301_s27 = sand.u32 (!%p1633_p11), 1, %s1104_s15   ;;  %p1634_p1 = scmp.ne.s32.totalorder (!%p1633_p11), %s1628_s23, 0 }
  0x5b   : > { %175 = sbr.rel (%p1633_p11) target bundleno = 362 (0x16a), region = 32  ;;  %s178_s30 = scalar_lea.sflag (!%p1633_p11), [#allocation4], %s1301_s27 }
  0x5c   : > { %s869_s22 = smul.u32 (!%p1633_p11), 608, %s1301_s27 }
  0x5e   : > { %s1305_s4 = scalar_lea.vmem (!%p1633_p11), [#allocation3], %s869_s22 }
  0x62   : > { %1091 = dma.done.wait (%p1634_p1), %s178_s30, 9728  }
  0x63   : > { %1093 = vsyncadd (%p1634_p1), %s178_s30, 4294957568  ;;  %p1635_p4 = scmp.eq.s32.totalorder %s1192_s2, 0 }
  0x65   : > { %1095 = dma.done.wait (%p1635_p4), [#allocation6], 64   ;;  %p1636_p3 = pmov %p1635_p4 }
  0x66   : > { %v296_v0 = vlaneseq  ;;  %v218_v6 = vld [vmem:[%s1305_s4] sm:$0xff]  ;;  %v219_v7 = vld [vmem:[%s1305_s4 + $0x8] sm:$0xff]  ;;  %v220_v8 = vld [vmem:[%s1305_s4 + $0x10] sm:$0xff]  ;;  %s487_s23 = sld [smem:[#allocation2]]  ;;  %s870_s25 = smul.u32 152, %s1301_s27  ;;  %vm508_vm0 = vcmask 7168  }
  0x67   : > { %1097 = vsyncadd (%p1636_p3), [#allocation6], 4294967232  ;;  %v221_v9 = vld [vmem:[%s1305_s4 + $0x18] sm:$0xff]  ;;  %v294_v10 = vld [vmem:[#allocation5] sm:$0xf]  ;;  %p1637_p6 = scmp.ne.s32.totalorder %s1629_s24, 0 }
  0x68   : > { %v297_v1 = vshrl.u32 %v296_v0, 7  ;;  %v226_v11 = vld [vmem:[%s1305_s4 + $0x40] sm:$0xff]  ;;  %v227_v16 = vld [vmem:[%s1305_s4 + $0x48] sm:$0xff]  ;;  %v228_v17 = vld [vmem:[%s1305_s4 + $0x50] sm:$0xff]  ;;  %s1476_s20 = scalar_lea.vmem [#allocation7], %s870_s25   ;;  %s535_s28 = smul.u32 (%p1637_p6), 19, %s1192_s2 }
  0x69   : > { %v229_v18 = vld [vmem:[%s1305_s4 + $0x58] sm:$0xff]  ;;  %v222_v19 = vld [vmem:[%s1305_s4 + $0x20] sm:$0xff]  ;;  %v223_v20 = vld [vmem:[%s1305_s4 + $0x28] sm:$0xff]  ;;  %s866_s29 = smul.u32 (%p1637_p6), 152, %s1192_s2 }
  0x6a   : > { %v298_v2 = vsub.s32 0, %v297_v1  ;;  %v302_v3 = vsub.s32 1, %v297_v1  ;;  %v306_v4 = vsub.s32 2, %v297_v1  ;;  %v310_v5 = vsub.s32 3, %v297_v1  ;;  %v224_v21 = vld [vmem:[%s1305_s4 + $0x30] sm:$0xff]  ;;  %v225_v26 = vld [vmem:[%s1305_s4 + $0x38] sm:$0xff] }
  0x6b   : > { %v230_v27 = vld [vmem:[%s1305_s4 + $0x60] sm:$0xff]  ;;  %v231_v28 = vld [vmem:[%s1305_s4 + $0x68] sm:$0xff]  ;;  %v232_v33 = vld [vmem:[%s1305_s4 + $0x70] sm:$0xff]  ;;  %s536_s5 = ssub.s32 (%p1637_p6), 75, %s535_s28  ;;  %s1523_s8 = scalar_lea.vmem (%p1637_p6), %s1623_s3, %s866_s29  }
  0x6c   : > { %v1320_v12 = vrot.slane %v294_v10, %v298_v2  ;;  %v1322_v13 = vrot.slane %v294_v10, %v302_v3  ;;  %v1324_v14 = vrot.slane %v294_v10, %v306_v4  ;;  %v1326_v15 = vrot.slane %v294_v10, %v310_v5  ;;  %v233_v34 = vld [vmem:[%s1305_s4 + $0x78] sm:$0xff]  ;;  %v234_v39 = vld [vmem:[%s1305_s4 + $0x80] sm:$0xff]  ;;  %v235_v40 = vld [vmem:[%s1305_s4 + $0x88] sm:$0xff]  ;;  %p537_p7 = scmp.lt.s32.totalorder (%p1637_p6), %s536_s5, 19 }
  0x6d   : > { %v236_v45 = vld [vmem:[%s1305_s4 + $0x90] sm:$0xff]  ;;  %v238_v50 = vld [vmem:[%s1305_s4 + $0xa0] sm:$0xff]  ;;  %v237_v53 = vld [vmem:[%s1305_s4 + $0x98] sm:$0xff] }
  0x6e   : > { %v316_v22 = vmul.f32 %v1320_v12, %v218_v6  ;;  %v317_v23 = vmul.f32 %v1322_v13, %v219_v7  ;;  %v318_v24 = vmul.f32 %v1324_v14, %v220_v8  ;;  %v319_v25 = vmul.f32 %v1326_v15, %v221_v9  ;;  %v239_v56 = vld [vmem:[%s1305_s4 + $0xa8] sm:$0xff]  ;;  %v240_v57 = vld [vmem:[%s1305_s4 + $0xb0] sm:$0xff]  ;;  %v242_v61 = vld [vmem:[%s1305_s4 + $0xc0] sm:$0xff] }
  0x6f   : > { %v324_v29 = vmul.f32 %v1320_v12, %v226_v11  ;;  %v325_v30 = vmul.f32 %v1322_v13, %v227_v16  ;;  %v326_v31 = vmul.f32 %v1324_v14, %v228_v17  ;;  %v327_v32 = vmul.f32 %v1326_v15, %v229_v18  ;;  %v243_v62 = vld [vmem:[%s1305_s4 + $0xc8] sm:$0xff]  ;;  %v241_v2 = vld [vmem:[%s1305_s4 + $0xb8] sm:$0xff]  ;;  %v244_v4 = vld [vmem:[%s1305_s4 + $0xd0] sm:$0xff] }
  0x70   : > { %v392_v35 = vadd.f32 %v317_v23, %v316_v22  ;;  %v320_v36 = vmul.f32 %v1320_v12, %v222_v19  ;;  %v321_v37 = vmul.f32 %v1322_v13, %v223_v20  ;;  %v322_v38 = vmul.f32 %v1324_v14, %v224_v21  ;;  %v246_v5 = vld [vmem:[%s1305_s4 + $0xe0] sm:$0xff]  ;;  %v245_v10 = vld [vmem:[%s1305_s4 + $0xd8] sm:$0xff]  ;;  %v247_v11 = vld [vmem:[%s1305_s4 + $0xe8] sm:$0xff] }
  0x71   : > { %v394_v41 = vadd.f32 %v325_v30, %v324_v29  ;;  %v323_v42 = vmul.f32 %v1326_v15, %v225_v26  ;;  %v328_v43 = vmul.f32 %v1320_v12, %v230_v27  ;;  %v329_v44 = vmul.f32 %v1322_v13, %v231_v28  ;;  %v248_v16 = vld [vmem:[%s1305_s4 + $0xf0] sm:$0xff]  ;;  %v250_v21 = vld [vmem:[%s1305_s4 + $0x100] sm:$0xff]  ;;  %v251_v22 = vld [vmem:[%s1305_s4 + $0x108] sm:$0xff] }
  0x72   : > { %v411_v46 = vadd.f32 %v392_v35, %v318_v24  ;;  %v393_v47 = vadd.f32 %v321_v37, %v320_v36  ;;  %v330_v48 = vmul.f32 %v1324_v14, %v232_v33  ;;  %v331_v49 = vmul.f32 %v1326_v15, %v233_v34  ;;  %v249_v26 = vld [vmem:[%s1305_s4 + $0xf8] sm:$0xff]  ;;  %v252_v28 = vld [vmem:[%s1305_s4 + $0x110] sm:$0xff]  ;;  %v254_v33 = vld [vmem:[%s1305_s4 + $0x120] sm:$0xff] }
  0x73   : > { %v413_v51 = vadd.f32 %v394_v41, %v326_v31  ;;  %v395_v52 = vadd.f32 %v329_v44, %v328_v43  ;;  %v332_v54 = vmul.f32 %v1320_v12, %v234_v39  ;;  %v333_v55 = vmul.f32 %v1322_v13, %v235_v40  ;;  %v255_v34 = vld [vmem:[%s1305_s4 + $0x128] sm:$0xff]  ;;  %v253_v37 = vld [vmem:[%s1305_s4 + $0x118] sm:$0xff]  ;;  %v256_v40 = vld [vmem:[%s1305_s4 + $0x130] sm:$0xff] }
  0x74   : > { %v430_v58 = vadd.f32 %v411_v46, %v319_v25  ;;  %v412_v59 = vadd.f32 %v393_v47, %v322_v38  ;;  %v334_v60 = vmul.f32 %v1324_v14, %v236_v45  ;;  %v336_v3 = vmul.f32 %v1320_v12, %v238_v50  ;;  %v258_v45 = vld [vmem:[%s1305_s4 + $0x140] sm:$0xff]  ;;  %v259_v46 = vld [vmem:[%s1305_s4 + $0x148] sm:$0xff] }
  0x75   : > { %v432_v63 = vadd.f32 %v413_v51, %v327_v32  ;;  %v414_v0 = vadd.f32 %v395_v52, %v330_v48  ;;  %v396_v1 = vadd.f32 %v333_v55, %v332_v54  ;;  %v335_v7 = vmul.f32 %v1326_v15, %v237_v53  ;;  %v260_v52 = vld [vmem:[%s1305_s4 + $0x150] sm:$0xff]  ;;  %v262_v53 = vld [vmem:[%s1305_s4 + $0x160] sm:$0xff] }
  0x76   : > { %449 = vadd.xlane.f32.xlu0 %v430_v58  ;;  %v431_v6 = vadd.f32 %v412_v59, %v323_v42  ;;  %v337_v8 = vmul.f32 %v1322_v13, %v239_v56  ;;  %v338_v9 = vmul.f32 %v1324_v14, %v240_v57  ;;  %v340_v19 = vmul.f32 %v1320_v12, %v242_v61  ;;  %v261_v58 = vld [vmem:[%s1305_s4 + $0x158] sm:$0xff]  ;;  %v263_v59 = vld [vmem:[%s1305_s4 + $0x168] sm:$0xff] }
  0x77   : > { %453 = vadd.xlane.f32.xlu1 %v432_v63  ;;  %v433_v17 = vadd.f32 %v414_v0, %v331_v49  ;;  %v415_v18 = vadd.f32 %v396_v1, %v334_v60  ;;  %v341_v20 = vmul.f32 %v1322_v13, %v243_v62  ;;  %v339_v23 = vmul.f32 %v1326_v15, %v241_v2  ;;  %v257_v49 = vld [vmem:[%s1305_s4 + $0x138] sm:$0xff]  ;;  %v264_v0 = vld [vmem:[%s1305_s4 + $0x170] sm:$0xff]  ;;  %v266_v1 = vld [vmem:[%s1305_s4 + $0x180] sm:$0xff] }
  0x78   : > { %v397_v24 = vadd.f32 %v337_v8, %v336_v3  ;;  %v342_v25 = vmul.f32 %v1324_v14, %v244_v4  ;;  %v344_v27 = vmul.f32 %v1320_v12, %v246_v5  ;;  %v343_v29 = vmul.f32 %v1326_v15, %v245_v10  ;;  %v267_v2 = vld [vmem:[%s1305_s4 + $0x188] sm:$0xff]  ;;  %v268_v8 = vld [vmem:[%s1305_s4 + $0x190] sm:$0xff] }
  0x79   : > { %v398_v30 = vadd.f32 %v341_v20, %v340_v19  ;;  %v345_v31 = vmul.f32 %v1322_v13, %v247_v11  ;;  %v346_v32 = vmul.f32 %v1324_v14, %v248_v16  ;;  %v434_v35 = vadd.f32 %v415_v18, %v335_v7  ;;  %v271_v18 = vld [vmem:[%s1305_s4 + $0x1a8] sm:$0xff] }
  0x7a   : > { %451 = vadd.xlane.f32.xlu0 %v431_v6  ;;  %v416_v36 = vadd.f32 %v397_v24, %v338_v9  ;;  %v348_v38 = vmul.f32 %v1320_v12, %v250_v21  ;;  %v349_v39 = vmul.f32 %v1322_v13, %v251_v22  ;;  %v347_v42 = vmul.f32 %v1326_v15, %v249_v26  ;;  %v265_v6 = vld [vmem:[%s1305_s4 + $0x178] sm:$0xff]  ;;  %v272_v24 = vld [vmem:[%s1305_s4 + $0x1b0] sm:$0xff] }
  0x7b   : > { %455 = vadd.xlane.f32.xlu1 %v433_v17  ;;  %v417_v41 = vadd.f32 %v398_v30, %v342_v25  ;;  %v399_v43 = vadd.f32 %v345_v31, %v344_v27  ;;  %v350_v44 = vmul.f32 %v1324_v14, %v252_v28  ;;  %v352_v50 = vmul.f32 %v1320_v12, %v254_v33  ;;  %v270_v17 = vld [vmem:[%s1305_s4 + $0x1a0] sm:$0xff]  ;;  %v269_v21 = vld [vmem:[%s1305_s4 + $0x198] sm:$0xff]  ;;  %v275_v30 = vld [vmem:[%s1305_s4 + $0x1c8] sm:$0xff] }
  0x7c   : > { %v435_v47 = vadd.f32 %v416_v36, %v339_v23  ;;  %v400_v48 = vadd.f32 %v349_v39, %v348_v38  ;;  %v353_v51 = vmul.f32 %v1322_v13, %v255_v34  ;;  %v351_v56 = vmul.f32 %v1326_v15, %v253_v37  ;;  %v273_v33 = vld [vmem:[%s1305_s4 + $0x1b8] sm:$0xff]  ;;  %v276_v36 = vld [vmem:[%s1305_s4 + $0x1d0] sm:$0xff]  ;;  %v278_v37 = vld [vmem:[%s1305_s4 + $0x1e0] sm:$0xff] }
  0x7d   : > { %v436_v54 = vadd.f32 %v417_v41, %v343_v29  ;;  %v418_v55 = vadd.f32 %v399_v43, %v346_v32  ;;  %v354_v57 = vmul.f32 %v1324_v14, %v256_v40  ;;  %v356_v62 = vmul.f32 %v1320_v12, %v258_v45  ;;  %v274_v29 = vld [vmem:[%s1305_s4 + $0x1c0] sm:$0xff]  ;;  %v279_v41 = vld [vmem:[%s1305_s4 + $0x1e8] sm:$0xff] }
  0x7e   : > { %457 = vadd.xlane.f32.xlu0 %v434_v35  ;;  %v419_v60 = vadd.f32 %v400_v48, %v350_v44  ;;  %v401_v61 = vadd.f32 %v353_v51, %v352_v50  ;;  %v357_v63 = vmul.f32 %v1322_v13, %v259_v46  ;;  %v355_v4 = vmul.f32 %v1326_v15, %v257_v49  ;;  %v280_v46 = vld [vmem:[%s1305_s4 + $0x1f0] sm:$0xff]  ;;  %v283_v48 = vld [vmem:[%s1305_s4 + $0x208] sm:$0xff]  ;;  %v277_v51 = vld [vmem:[%s1305_s4 + $0x1d8] sm:$0xff] }
  0x7f   : > { %459 = vadd.xlane.f32.xlu1 %v435_v47  ;;  %v437_v3 = vadd.f32 %v418_v55, %v347_v42  ;;  %v358_v5 = vmul.f32 %v1324_v14, %v260_v52  ;;  %v360_v7 = vmul.f32 %v1320_v12, %v262_v53  ;;  %v359_v10 = vmul.f32 %v1326_v15, %v261_v58  ;;  %v282_v47 = vld [vmem:[%s1305_s4 + $0x200] sm:$0xff]  ;;  %v284_v58 = vld [vmem:[%s1305_s4 + $0x210] sm:$0xff] }
  0x80   : > { %v420_v9 = vadd.f32 %v401_v61, %v354_v57  ;;  %v402_v11 = vadd.f32 %v357_v63, %v356_v62  ;;  %v361_v16 = vmul.f32 %v1322_v13, %v263_v59  ;;  %v438_v19 = vadd.f32 %v419_v60, %v351_v56  ;;  %v286_v59 = vld [vmem:[%s1305_s4 + $0x220] sm:$0xff]  ;;  %v287_v60 = vld [vmem:[%s1305_s4 + $0x228] sm:$0xff]  ;;  %v281_v61 = vld [vmem:[%s1305_s4 + $0x1f8] sm:$0xff] }
  0x81   : > { %v362_v20 = vmul.f32 %v1324_v14, %v264_v0  ;;  %v364_v22 = vmul.f32 %v1320_v12, %v266_v1  ;;  %v365_v23 = vmul.f32 %v1322_v13, %v267_v2  ;;  %v363_v26 = vmul.f32 %v1326_v15, %v265_v6  ;;  %v288_v1 = vld [vmem:[%s1305_s4 + $0x230] sm:$0xff]  ;;  %v290_v6 = vld [vmem:[%s1305_s4 + $0x240] sm:$0xff] }
  0x82   : > { %461 = vadd.xlane.f32.xlu0 %v436_v54  ;;  %v421_v25 = vadd.f32 %v402_v11, %v358_v5  ;;  %v403_v27 = vadd.f32 %v361_v16, %v360_v7  ;;  %v366_v28 = vmul.f32 %v1324_v14, %v268_v8  ;;  %v439_v31 = vadd.f32 %v420_v9, %v355_v4  ;;  %v291_v7 = vld [vmem:[%s1305_s4 + $0x248] sm:$0xff]  ;;  %v285_v8 = vld [vmem:[%s1305_s4 + $0x218] sm:$0xff] }
  0x83   : > { %463 = vadd.xlane.f32.xlu1 %v437_v3  ;;  %v404_v32 = vadd.f32 %v365_v23, %v364_v22  ;;  %v368_v34 = vmul.f32 %v1320_v12, %v270_v17  ;;  %v369_v35 = vmul.f32 %v1322_v13, %v271_v18  ;;  %v367_v39 = vmul.f32 %v1326_v15, %v269_v21  ;;  %v292_v21 = vld [vmem:[%s1305_s4 + $0x250] sm:$0xff]  ;;  %v289_v22 = vld [vmem:[%s1305_s4 + $0x238] sm:$0xff] }
  0x84   : > { %v422_v38 = vadd.f32 %v403_v27, %v362_v20  ;;  %v370_v40 = vmul.f32 %v1324_v14, %v272_v24  ;;  %v372_v44 = vmul.f32 %v1320_v12, %v274_v29  ;;  %v373_v45 = vmul.f32 %v1322_v13, %v275_v30 }
  0x85   : > { %v423_v42 = vadd.f32 %v404_v32, %v366_v28  ;;  %v405_v43 = vadd.f32 %v369_v35, %v368_v34  ;;  %v440_v49 = vadd.f32 %v421_v25, %v359_v10  ;;  %v371_v50 = vmul.f32 %v1326_v15, %v273_v33  ;;  %v293_v34 = vld [vmem:[%s1305_s4 + $0x258] sm:$0xff] }
  0x86   : > { %465 = vadd.xlane.f32.xlu0 %v438_v19  ;;  %v374_v52 = vmul.f32 %v1324_v14, %v276_v36  ;;  %v376_v53 = vmul.f32 %v1320_v12, %v278_v37  ;;  %v441_v54 = vadd.f32 %v422_v38, %v363_v26  ;;  %v406_v56 = vadd.f32 %v373_v45, %v372_v44 }
  0x87   : > { %467 = vadd.xlane.f32.xlu1 %v439_v31  ;;  %v424_v55 = vadd.f32 %v405_v43, %v370_v40  ;;  %v377_v57 = vmul.f32 %v1322_v13, %v279_v41  ;;  %v378_v62 = vmul.f32 %v1324_v14, %v280_v46  ;;  %v380_v63 = vmul.f32 %v1320_v12, %v282_v47 }
  0x88   : > { %v381_v0 = vmul.f32 %v1322_v13, %v283_v48  ;;  %v442_v2 = vadd.f32 %v423_v42, %v367_v39  ;;  %v375_v3 = vmul.f32 %v1326_v15, %v277_v51  ;;  %v425_v4 = vadd.f32 %v406_v56, %v374_v52 }
  0x89   : > { %v407_v5 = vadd.f32 %v377_v57, %v376_v53  ;;  %v382_v9 = vmul.f32 %v1324_v14, %v284_v58  ;;  %v384_v11 = vmul.f32 %v1320_v12, %v286_v59  ;;  %v385_v16 = vmul.f32 %v1322_v13, %v287_v60 }
  0x8a   : > { %469 = vadd.xlane.f32.xlu0 %v440_v49  ;;  %v408_v10 = vadd.f32 %v381_v0, %v380_v63  ;;  %v443_v17 = vadd.f32 %v424_v55, %v371_v50  ;;  %v379_v18 = vmul.f32 %v1326_v15, %v281_v61  ;;  %v386_v20 = vmul.f32 %v1324_v14, %v288_v1 }
  0x8b   : > { %471 = vadd.xlane.f32.xlu1 %v441_v54  ;;  %v426_v19 = vadd.f32 %v407_v5, %v378_v62  ;;  %v409_v23 = vadd.f32 %v385_v16, %v384_v11  ;;  %v388_v24 = vmul.f32 %v1320_v12, %v290_v6  ;;  %v389_v25 = vmul.f32 %v1322_v13, %v291_v7 }
  0x8c   : > { %v383_v26 = vmul.f32 %v1326_v15, %v285_v8  ;;  %v444_v27 = vadd.f32 %v425_v4, %v375_v3  ;;  %v427_v28 = vadd.f32 %v408_v10, %v382_v9  ;;  %v390_v29 = vmul.f32 %v1324_v14, %v292_v21 }
  0x8d   : > { %v410_v30 = vadd.f32 %v389_v25, %v388_v24  ;;  %v445_v31 = vadd.f32 %v426_v19, %v379_v18  ;;  %v387_v32 = vmul.f32 %v1326_v15, %v289_v22  ;;  %v428_v33 = vadd.f32 %v409_v23, %v386_v20 }
  0x8e   : > { %473 = vadd.xlane.f32.xlu0 %v442_v2  ;;  %v446_v35 = vadd.f32 %v427_v28, %v383_v26  ;;  %v391_v12 = vmul.f32 %v1326_v15, %v293_v34  ;;  %v488_v14 = vstv %s487_s23 }
  0x8f   : > { %475 = vadd.xlane.f32.xlu1 %v443_v17  ;;  %v429_v13 = vadd.f32 %v410_v30, %v390_v29  ;;  %v447_v36 = vadd.f32 %v428_v33, %v387_v32 }
  0x91   : > { %v448_v37 = vadd.f32 %v429_v13, %v391_v12 }
  0x92   : > { %477 = vadd.xlane.f32.xlu0 %v444_v27 }
  0x93   : > { %479 = vadd.xlane.f32.xlu1 %v445_v31 }
  0x96   : > { %481 = vadd.xlane.f32.xlu0 %v446_v35 }
  0x97   : > { %483 = vadd.xlane.f32.xlu1 %v447_v36 }
  0x9a   : > { %485 = vadd.xlane.f32.xlu0 %v448_v37 }
 0x103   : > { %v450_v38 = vpop.xlane.xlu0 %449 }
 0x104   : > { %v489_v39 = vadd.f32 %v488_v14, %v450_v38  ;;  %v454_v40 = vpop.xlane.xlu1 %453 }
 0x105   : > { %v491_v41 = vadd.f32 %v488_v14, %v454_v40 }
 0x106   : > { %509 = vst.msk [vmem:[%s1476_s20] sm:$0xff] %vm508_vm0, %v489_v39 }
 0x107   : > { %511 = vst.msk [vmem:[%s1476_s20 + $0x10] sm:$0xff] %vm508_vm0, %v491_v41  ;;  %v452_v15 = vpop.xlane.xlu0 %451 }
 0x108   : > { %v490_v42 = vadd.f32 %v488_v14, %v452_v15  ;;  %v456_v43 = vpop.xlane.xlu1 %455 }
 0x109   : > { %v492_v44 = vadd.f32 %v488_v14, %v456_v43 }
 0x10a   : > { %510 = vst.msk [vmem:[%s1476_s20 + $0x8] sm:$0xff] %vm508_vm0, %v490_v42 }
 0x10b   : > { %512 = vst.msk [vmem:[%s1476_s20 + $0x18] sm:$0xff] %vm508_vm0, %v492_v44  ;;  %v458_v45 = vpop.xlane.xlu0 %457 }
 0x10c   : > { %v493_v46 = vadd.f32 %v488_v14, %v458_v45  ;;  %v460_v47 = vpop.xlane.xlu1 %459 }
 0x10d   : > { %v494_v48 = vadd.f32 %v488_v14, %v460_v47 }
 0x10e   : > { %513 = vst.msk [vmem:[%s1476_s20 + $0x20] sm:$0xff] %vm508_vm0, %v493_v46 }
 0x10f   : > { %514 = vst.msk [vmem:[%s1476_s20 + $0x28] sm:$0xff] %vm508_vm0, %v494_v48  ;;  %v462_v49 = vpop.xlane.xlu0 %461 }
 0x110   : > { %v495_v50 = vadd.f32 %v488_v14, %v462_v49  ;;  %v464_v51 = vpop.xlane.xlu1 %463 }
 0x111   : > { %v496_v52 = vadd.f32 %v488_v14, %v464_v51 }
 0x112   : > { %515 = vst.msk [vmem:[%s1476_s20 + $0x30] sm:$0xff] %vm508_vm0, %v495_v50 }
 0x113   : > { %516 = vst.msk [vmem:[%s1476_s20 + $0x38] sm:$0xff] %vm508_vm0, %v496_v52  ;;  %v466_v53 = vpop.xlane.xlu0 %465 }
 0x114   : > { %v497_v54 = vadd.f32 %v488_v14, %v466_v53  ;;  %v468_v55 = vpop.xlane.xlu1 %467 }
 0x115   : > { %v498_v56 = vadd.f32 %v488_v14, %v468_v55 }
 0x116   : > { %517 = vst.msk [vmem:[%s1476_s20 + $0x40] sm:$0xff] %vm508_vm0, %v497_v54 }
 0x117   : > { %518 = vst.msk [vmem:[%s1476_s20 + $0x48] sm:$0xff] %vm508_vm0, %v498_v56  ;;  %v470_v57 = vpop.xlane.xlu0 %469 }
 0x118   : > { %v499_v58 = vadd.f32 %v488_v14, %v470_v57  ;;  %v472_v59 = vpop.xlane.xlu1 %471 }
 0x119   : > { %v500_v60 = vadd.f32 %v488_v14, %v472_v59 }
 0x11a   : > { %519 = vst.msk [vmem:[%s1476_s20 + $0x50] sm:$0xff] %vm508_vm0, %v499_v58 }
 0x11b   : > { %520 = vst.msk [vmem:[%s1476_s20 + $0x58] sm:$0xff] %vm508_vm0, %v500_v60  ;;  %v474_v61 = vpop.xlane.xlu0 %473 }
 0x11c   : > { %v501_v62 = vadd.f32 %v488_v14, %v474_v61  ;;  %v476_v63 = vpop.xlane.xlu1 %475 }
 0x11d   : > { %v502_v0 = vadd.f32 %v488_v14, %v476_v63 }
 0x11e   : > { %521 = vst.msk [vmem:[%s1476_s20 + $0x60] sm:$0xff] %vm508_vm0, %v501_v62 }
 0x11f   : > { %522 = vst.msk [vmem:[%s1476_s20 + $0x68] sm:$0xff] %vm508_vm0, %v502_v0  ;;  %v478_v1 = vpop.xlane.xlu0 %477 }
 0x120   : > { %v503_v2 = vadd.f32 %v488_v14, %v478_v1  ;;  %v480_v3 = vpop.xlane.xlu1 %479 }
 0x121   : > { %v504_v4 = vadd.f32 %v488_v14, %v480_v3 }
 0x122   : > { %523 = vst.msk [vmem:[%s1476_s20 + $0x70] sm:$0xff] %vm508_vm0, %v503_v2 }
 0x123   : > { %524 = vst.msk [vmem:[%s1476_s20 + $0x78] sm:$0xff] %vm508_vm0, %v504_v4  ;;  %v482_v5 = vpop.xlane.xlu0 %481 }
 0x124   : > { %v505_v6 = vadd.f32 %v488_v14, %v482_v5  ;;  %v484_v7 = vpop.xlane.xlu1 %483  ;;  %534 = sbr.rel (!%p1637_p6) target bundleno = 362 (0x16a), region = 44 }
 0x125   : > { %v506_v8 = vadd.f32 %v488_v14, %v484_v7 }
 0x126   : > { %525 = vst.msk [vmem:[%s1476_s20 + $0x80] sm:$0xff] %vm508_vm0, %v505_v6 }
 0x127   : > { %526 = vst.msk [vmem:[%s1476_s20 + $0x88] sm:$0xff] %vm508_vm0, %v506_v8  ;;  %v486_v9 = vpop.xlane.xlu0 %485 }
 0x128   : > { %v507_v10 = vadd.f32 %v488_v14, %v486_v9 }
 0x12a   : > { %527 = vst.msk [vmem:[%s1476_s20 + $0x90] sm:$0xff] %vm508_vm0, %v507_v10 }
 0x12b   : > { %s1648_s5 = smov (!%p537_p7, %s536_s5), 19 }
 0x12c   : > { %s851_s17 = sshll.u32 %s1648_s5, 7 }
 0x12d   : > { %p854_p9 = scmp.eq.s32.totalorder %s851_s17, 0 }
 0x12e   : > { %982 = sdivrem.u32 (!%p854_p9), %s1648_s5, 19 }
 0x12f   : > { %545 = sbr.rel (%p854_p9) target bundleno = 362 (0x16a), region = 48 }
 0x137   : > { %s1529_s24 = spop.drf %982 }
 0x138   : > { %p855_p12 = scmp.le.s32.totalorder %s1529_s24, 0 }
 0x139   : > { %s1638_s2 = smov (!%p855_p12), %s1523_s8  ;;  %s1639_s9 = smov (!%p855_p12), %s1476_s20 }
 0x13a   : > { %782 = sbr.rel (%p855_p12) target bundleno = 333 (0x14d), region = 130  ;;  %s1538_s10 = smov (!%p855_p12), 0  }
 0x13b   : > { %s1540_s11 = smov (!%p855_p12), 0  }
 0x141 LB: >> { %v645_v11 = vld [vmem:[%s1120_s9] sm:$0xff]  ;;  %v647_v16 = vld [vmem:[%s1120_s9 + $0x8] sm:$0xff]  ;;  %v649_v17 = vld [vmem:[%s1120_s9 + $0x10] sm:$0xff]  ;;  %s683_s12 = sadd.s32 1, %s1124_s10  ;;  %s639_s11 = sadd.s32 1, %s1128_s11   ;;  %s1128_s11 = sphi %s1540_s11, %s639_s11   ;;  %s1124_s10 = sphi %s1538_s10, %s1640_s10   ;;  %s1120_s9 = sphi %s1639_s9, %s688_s9   ;;  %s1116_s2 = sphi %s1638_s2, %s689_s2  }
 0x142   : >> { %646 = vst [vmem:[%s1116_s2] sm:$0xff] %v645_v11  ;;  %648 = vst [vmem:[%s1116_s2 + $0x8] sm:$0xff] %v647_v16  ;;  %v651_v18 = vld [vmem:[%s1120_s9 + $0x18] sm:$0xff]  ;;  %v653_v19 = vld [vmem:[%s1120_s9 + $0x20] sm:$0xff]  ;;  %p684_p0 = scmp.ge.s32.totalorder %s683_s12, %s1529_s24  ;;  %p638_p2 = scmp.ge.s32.totalorder %s639_s11, %s1529_s24 }
 0x143   : >> { %650 = vst [vmem:[%s1116_s2 + $0x10] sm:$0xff] %v649_v17  ;;  %v655_v20 = vld [vmem:[%s1120_s9 + $0x28] sm:$0xff]  ;;  %652 = vst [vmem:[%s1116_s2 + $0x18] sm:$0xff] %v651_v18  ;;  %v657_v21 = vld [vmem:[%s1120_s9 + $0x30] sm:$0xff] }
 0x144   : >> { %654 = vst [vmem:[%s1116_s2 + $0x20] sm:$0xff] %v653_v19  ;;  %656 = vst [vmem:[%s1116_s2 + $0x28] sm:$0xff] %v655_v20  ;;  %v659_v22 = vld [vmem:[%s1120_s9 + $0x38] sm:$0xff]  ;;  %v661_v23 = vld [vmem:[%s1120_s9 + $0x40] sm:$0xff]  ;;  %s1650_s12 = smov (%p684_p0, %s683_s12), 0 }
 0x145   : >> { %658 = vst [vmem:[%s1116_s2 + $0x30] sm:$0xff] %v657_v21  ;;  %660 = vst [vmem:[%s1116_s2 + $0x38] sm:$0xff] %v659_v22  ;;  %v663_v24 = vld [vmem:[%s1120_s9 + $0x48] sm:$0xff]  ;;  %v665_v25 = vld [vmem:[%s1120_s9 + $0x50] sm:$0xff]  ;;  %s686_s13 = smul.u32 152, %s1650_s12  ;;  %s1640_s10 = smov %s1650_s12 }
 0x146   : >> { %662 = vst [vmem:[%s1116_s2 + $0x40] sm:$0xff] %v661_v23  ;;  %v667_v26 = vld [vmem:[%s1120_s9 + $0x58] sm:$0xff]  ;;  %664 = vst [vmem:[%s1116_s2 + $0x48] sm:$0xff] %v663_v24  ;;  %v669_v27 = vld [vmem:[%s1120_s9 + $0x60] sm:$0xff]  ;;  %641 = sbr.rel (!%p638_p2) target bundleno = 321 (0x141), region = 136 }
 0x147   : >> { %666 = vst [vmem:[%s1116_s2 + $0x50] sm:$0xff] %v665_v25  ;;  %668 = vst [vmem:[%s1116_s2 + $0x58] sm:$0xff] %v667_v26  ;;  %v671_v28 = vld [vmem:[%s1120_s9 + $0x68] sm:$0xff]  ;;  %v673_v29 = vld [vmem:[%s1120_s9 + $0x70] sm:$0xff] }
 0x148   : >> { %670 = vst [vmem:[%s1116_s2 + $0x60] sm:$0xff] %v669_v27  ;;  %672 = vst [vmem:[%s1116_s2 + $0x68] sm:$0xff] %v671_v28  ;;  %v675_v30 = vld [vmem:[%s1120_s9 + $0x78] sm:$0xff]  ;;  %v677_v31 = vld [vmem:[%s1120_s9 + $0x80] sm:$0xff] }
 0x149   : >> { %674 = vst [vmem:[%s1116_s2 + $0x70] sm:$0xff] %v673_v29  ;;  %v679_v32 = vld [vmem:[%s1120_s9 + $0x88] sm:$0xff]  ;;  %676 = vst [vmem:[%s1116_s2 + $0x78] sm:$0xff] %v675_v30  ;;  %v681_v33 = vld [vmem:[%s1120_s9 + $0x90] sm:$0xff]  ;;  %s688_s9 = scalar_lea.vmem %s1476_s20, %s686_s13 [#allocation7]  }
 0x14a   : >> { %678 = vst [vmem:[%s1116_s2 + $0x80] sm:$0xff] %v677_v31  ;;  %680 = vst [vmem:[%s1116_s2 + $0x88] sm:$0xff] %v679_v32 }
 0x14b   : >> { %682 = vst [vmem:[%s1116_s2 + $0x90] sm:$0xff] %v681_v33  ;;  %s689_s2 = scalar_lea.vmem %s1523_s8, %s686_s13  }
 0x14d PF: > { %984 = sdivrem.u32 %s1648_s5, 19 }
 0x14e   : > { %s856_s14 = smul.u32 152, %s1529_s24 }
 0x150   : > { %s694_s19 = scalar_lea.vmem %s1476_s20, %s856_s14 [#allocation7]   ;;  %s696_s26 = scalar_lea.vmem %s1523_s8, %s856_s14  }
 0x156   : > { %s985_s27 = spop.drf %984 }
 0x157   : > { %p858_p5 = scmp.le.s32.totalorder %s985_s27, 0 }
 0x158   : > { %s1130_s22 = smov (!%p858_p5), %s696_s26   ;;  %s1134_s30 = smov (!%p858_p5), %s694_s19  }
 0x159   : > { %796 = sbr.rel (%p858_p5) target bundleno = 362 (0x16a), region = 141  ;;  %s1138_s4 = smov (!%p858_p5), 0  }
 0x15a   : > { %s1142_s23 = smov (!%p858_p5), 0  }
 0x160 LB: >> { %v706_v34 = vld [vmem:[%s1136_s30] sm:$0xff]  ;;  %s708_s25 = sadd.s32 1, %s1140_s4  ;;  %s700_s23 = sadd.s32 1, %s1144_s23   ;;  %s1144_s23 = sphi %s1142_s23, %s700_s23   ;;  %s1140_s4 = sphi %s1138_s4, %s1139_s4   ;;  %s1136_s30 = sphi %s1134_s30, %s713_s30   ;;  %s1132_s22 = sphi %s1130_s22, %s714_s22  }
 0x161   : >> { %707 = vst [vmem:[%s1132_s22] sm:$0xff] %v706_v34  ;;  %p709_p8 = scmp.ge.s32.totalorder %s708_s25, %s985_s27  ;;  %p699_p10 = scmp.ge.s32.totalorder %s700_s23, %s985_s27 }
 0x163   : >> { %s1652_s25 = smov (%p709_p8, %s708_s25), 0  ;;  %702 = sbr.rel (!%p699_p10) target bundleno = 352 (0x160), region = 147 }
 0x164   : >> { %s859_s20 = sshll.u32 %s1652_s25, 3  ;;  %s1139_s4 = smov %s1652_s25  }
 0x165   : >> { %s713_s30 = scalar_lea.vmem %s694_s19, %s859_s20 [#allocation7]   ;;  %s714_s22 = scalar_lea.vmem %s696_s26, %s859_s20  }
 0x16a PF: > { %p15_p13 = scmp.ge.s32.totalorder %s1195_s18, 6   ;;  %s1641_s14 = smov %s1104_s15 }
 0x16b   : > { %s1642_s15 = smov %s1108_s16  ;;  %s1643_s16 = smov %s1205_s21 }
 0x16c   : > { %s1644_s17 = smov %s1195_s18  ;;  %17 = sbr.rel (!%p15_p13) target bundleno = 6 (0x6), region = 158 }
 0x173   :  { %730 = vsyncpa [#allocation4], 1 }
 0x174   :  { %732 = vsyncpa [#allocation4 + $0x1], 1 }
 0x175   :  { %733 = vsyncpa [#allocation6], 1 }

</bundles_post_ra>
